<compile_context>
chip_gen: v6e
topology: v6e:2x2x1
jax: 0.10.0
libtpu: 0.0.40
codegen_flags: <defaults>
</compile_context>

<pallas_src>
import functools

import jax
import jax.numpy as jnp
from jax.experimental import pallas as pl
from jax.experimental.pallas import tpu as pltpu

# Explicit scoped-VMEM budget; safe on v5e (128 MiB), v6e (128 MiB) and v7x (64 MiB).
_VMEM_LIMIT = 32 * 1024 * 1024


def _round_up(x, m):
    return (x + m - 1) // m * m


# ----------------------------------------------------------------------------
# K1: MLP node embedding (the DGM feature network, hparams['dgm_layers'])
#     Row-tiled over N; the tiny weights keep a constant block index so they
#     stay resident in VMEM while x / z row-tiles stream (double-buffered).
# ----------------------------------------------------------------------------
def _mlp_kernel(x_ref, w1_ref, b1_ref, w2_ref, b2_ref, z_ref):
    h = jnp.dot(x_ref[...], w1_ref[...], preferred_element_type=jnp.float32) + b1_ref[...]
    h = jnp.maximum(h, 0.0)                                   # ReLU in f32 (v5e has no bf16 VPU)
    z_ref[...] = jnp.dot(h, w2_ref[...], preferred_element_type=jnp.float32) + b2_ref[...]


def mlp_embed(x, w1, b1, w2, b2, *, tile_n=256):
    n, f = x.shape
    h = w1.shape[1]
    d = w2.shape[1]
    n_pad = _round_up(n, tile_n)
    xp = jnp.pad(x, ((0, n_pad - n), (0, 0)))
    z = pl.pallas_call(
        _mlp_kernel,
        out_shape=jax.ShapeDtypeStruct((n_pad, d), jnp.float32),
        grid=(n_pad // tile_n,),
        in_specs=[
            pl.BlockSpec((tile_n, f), lambda i: (i, 0)),      # x row tiles stream
            pl.BlockSpec((f, h), lambda i: (0, 0)),           # weights: constant block -> resident
            pl.BlockSpec((1, h), lambda i: (0, 0)),
            pl.BlockSpec((h, d), lambda i: (0, 0)),
            pl.BlockSpec((1, d), lambda i: (0, 0)),
        ],
        out_specs=pl.BlockSpec((tile_n, d), lambda i: (i, 0)),
        compiler_params=pltpu.CompilerParams(
            dimension_semantics=("parallel",),
            vmem_limit_bytes=_VMEM_LIMIT),
    )(xp, w1, b1, w2, b2)
    return z[:n]


# ----------------------------------------------------------------------------
# K2: DGM pairwise edge probabilities P_ij = exp(-gamma * ||z_i - z_j||^2)
#     2-D grid over (row tile, col tile); sq_i comes from the row tile and
#     sq_j from a pre-transposed z (so no in-kernel cross-lane transpose and
#     the dot contracts on the natural last/first dims). Gram uses full-f32
#     MXU precision to avoid catastrophic-cancellation noise in d^2.
# ----------------------------------------------------------------------------
def _edge_prob_kernel(zi_ref, zjt_ref, p_ref, *, gamma):
    zi = zi_ref[...]                                          # (TM, D)
    zjt = zjt_ref[...]                                        # (D, TN)
    sq_i = jnp.sum(zi * zi, axis=-1, keepdims=True)           # (TM, 1)
    sq_j = jnp.sum(zjt * zjt, axis=0, keepdims=True)          # (1, TN)  (sublane reduce, no transpose)
    gram = jnp.dot(zi, zjt, preferred_element_type=jnp.float32,
                   precision=jax.lax.Precision.HIGHEST)       # (TM, TN)
    d2 = jnp.maximum(sq_i + sq_j - 2.0 * gram, 0.0)
    p_ref[...] = jnp.exp(-gamma * d2)


def edge_probs(z, gamma, *, tile=256):
    n, d = z.shape
    n_pad = _round_up(n, tile)
    zp = jnp.pad(z, ((0, n_pad - n), (0, 0)))
    zt = zp.T                                                 # one-time (D, N) transpose outside the kernel
    p = pl.pallas_call(
        functools.partial(_edge_prob_kernel, gamma=float(gamma)),
        out_shape=jax.ShapeDtypeStruct((n_pad, n_pad), jnp.float32),
        grid=(n_pad // tile, n_pad // tile),
        in_specs=[pl.BlockSpec((tile, d), lambda i, j: (i, 0)),
                  pl.BlockSpec((d, tile), lambda i, j: (0, j))],
        out_specs=pl.BlockSpec((tile, tile), lambda i, j: (i, j)),
        compiler_params=pltpu.CompilerParams(
            dimension_semantics=("parallel", "parallel"),
            vmem_limit_bytes=_VMEM_LIMIT),
    )(zp, zt)
    return p[:n, :n]


# ----------------------------------------------------------------------------
# K3: line-graph down Laplacian  Ldo = B1^T B1  (signed node-edge incidence B1)
#     Computed WITHOUT materializing B1:
#       Ldo[a,b] = (row_a==row_b) + (col_a==col_b) - (row_a==col_b) - (col_a==row_b)
#     (exactly equals B1^T B1, including the zero rows/cols for self-loop edges).
#     Tiled 2-D over E x E; pure VPU compares/adds, no MXU, no (N,E) blowup.
# ----------------------------------------------------------------------------
def _ldo_kernel(ra_ref, ca_ref, rb_ref, cb_ref, ldo_ref):
    ra = ra_ref[...]                                          # (TA, 1) int32
    ca = ca_ref[...]                                          # (TA, 1)
    rb = rb_ref[...]                                          # (1, TB)
    cb = cb_ref[...]                                          # (1, TB)
    ldo_ref[...] = ((ra == rb).astype(jnp.float32) + (ca == cb).astype(jnp.float32)
                    - (ra == cb).astype(jnp.float32) - (ca == rb).astype(jnp.float32))


def ldo_laplacian(row, col, *, tile=256):
    e = row.shape[0]
    e_pad = _round_up(e, tile)
    r = jnp.pad(row.astype(jnp.int32), (0, e_pad - e), constant_values=-1)
    c = jnp.pad(col.astype(jnp.int32), (0, e_pad - e), constant_values=-1)
    ra = r.reshape(e_pad, 1)
    ca = c.reshape(e_pad, 1)
    rb = r.reshape(1, e_pad)
    cb = c.reshape(1, e_pad)
    ldo = pl.pallas_call(
        _ldo_kernel,
        out_shape=jax.ShapeDtypeStruct((e_pad, e_pad), jnp.float32),
        grid=(e_pad // tile, e_pad // tile),
        in_specs=[pl.BlockSpec((tile, 1), lambda a, b: (a, 0)),
                  pl.BlockSpec((tile, 1), lambda a, b: (a, 0)),
                  pl.BlockSpec((1, tile), lambda a, b: (0, b)),
                  pl.BlockSpec((1, tile), lambda a, b: (0, b))],
        out_specs=pl.BlockSpec((tile, tile), lambda a, b: (a, b)),
        compiler_params=pltpu.CompilerParams(
            dimension_semantics=("parallel", "parallel"),
            vmem_limit_bytes=_VMEM_LIMIT),
    )(ra, ca, rb, cb)
    return ldo[:e, :e]


# ----------------------------------------------------------------------------
# K5: np_probs = scatter_sum(poly, row) + scatter_sum(poly, col)
#     row == repeat(arange(n), k) by construction, so the row-scatter is a
#     trivial (n, k) reshape + sum done outside the kernel and passed in as a
#     lane-dense (1, N) init. The col-scatter is a tiled mask*poly multiply +
#     sublane reduce accumulated into a lane-dense (1, N) output (no (N,E)
#     one-hot matmul, no 1-lane masked stores).
# ----------------------------------------------------------------------------
def _scatter_kernel(rowpart_ref, col_ref, poly_ref, out_ref):
    @pl.when(pl.program_id(1) == 0)
    def _():
        out_ref[...] = rowpart_ref[...]
    tn = out_ref.shape[1]
    ids = jax.lax.broadcasted_iota(jnp.int32, (1, tn), 1) + pl.program_id(0) * tn
    mask = (col_ref[...] == ids).astype(jnp.float32)          # (TE, TN)
    out_ref[...] += jnp.sum(mask * poly_ref[...], axis=0, keepdims=True)


def scatter_np(col, poly, num_nodes, k, *, tile_n=256, tile_e=256):
    # Row part: row = repeat(arange(n), k) -> contiguous per-node sum.
    row_part = poly.reshape(num_nodes, k).sum(axis=1)         # (n,)
    e = col.shape[0]
    n_pad = _round_up(num_nodes, tile_n)
    e_pad = _round_up(e, tile_e)
    rowpart_p = jnp.pad(row_part, (0, n_pad - num_nodes)).reshape(1, n_pad)
    col_p = jnp.pad(col.astype(jnp.int32), (0, e_pad - e), constant_values=-1).reshape(e_pad, 1)
    poly_p = jnp.pad(poly, (0, e_pad - e)).reshape(e_pad, 1)
    out = pl.pallas_call(
        _scatter_kernel,
        out_shape=jax.ShapeDtypeStruct((1, n_pad), jnp.float32),
        grid=(n_pad // tile_n, e_pad // tile_e),              # reduction (edge) axis last
        in_specs=[pl.BlockSpec((1, tile_n), lambda ni, ei: (0, ni)),
                  pl.BlockSpec((tile_e, 1), lambda ni, ei: (ei, 0)),
                  pl.BlockSpec((tile_e, 1), lambda ni, ei: (ei, 0))],
        out_specs=pl.BlockSpec((1, tile_n), lambda ni, ei: (0, ni)),
        compiler_params=pltpu.CompilerParams(
            dimension_semantics=("parallel", "arbitrary"),
            vmem_limit_bytes=_VMEM_LIMIT),
    )(rowpart_p, col_p, poly_p)
    return out[0, :num_nodes]


# ----------------------------------------------------------------------------
# DCM forward (glue in plain JAX, hot paths in the Pallas kernels above)
# ----------------------------------------------------------------------------
def dcm_forward(params, data, hparams):
    x = data['x']                                   # (N, F)
    n = x.shape[0]
    k = hparams['k']

    # ---- DGM(MLP): embed detached features, build k-NN edges from probs ----
    x_aux = jax.lax.stop_gradient(x)
    z = mlp_embed(x_aux, params['w1'], params['b1'], params['w2'], params['b2'])
    p = edge_probs(z, hparams['gamma'])             # (N, N)
    # TODO(synk): DGM samples edges with gumbel noise (std); deterministic top-k here.
    p_noself = p - 2.0 * jnp.eye(n, dtype=jnp.float32)
    _, topi = jax.lax.top_k(p_noself, k)            # (N, k)
    src = jnp.repeat(jnp.arange(n, dtype=jnp.int32), k)
    dst = topi.reshape(-1).astype(jnp.int32)
    edges = jnp.stack([src, dst], axis=0)           # (2, N*k)
    ne_probs = p[src, dst]                          # (N*k,)

    # ---- compute_boundary / line_graph (data-dependent structure, JAX glue) ----
    row, col = src, dst
    xe = 0.5 * (x[row] + x[col])                    # (E, F)   edge features
    e = row.shape[0]
    ldo = ldo_laplacian(row, col)                   # (E, E)

    # ---- compute_Lup_entmax ----
    # Faithful torch LayerNorm(normalized_shape=1): the normalized value of a
    # size-1 trailing dim is identically 0, so ln == bias for every edge and the
    # per-edge score is dead code -> poly_probs is the constant exp(-b^2/(2*std^2)).
    # TODO(synk): polygon/boundary enumeration and entmax over polygon scores are
    # data-dependent combinatorics with no static Pallas mapping; Lup is not
    # materialized (returned as None) to avoid an E x E HBM allocation of zeros.
    ln_b = params['ln_b'][0, 0]
    poly_const = jnp.exp(-(ln_b * ln_b) / (2.0 * float(hparams['std']) ** 2))
    poly_probs = jnp.full((e,), poly_const, jnp.float32)
    lup = None

    np_probs = scatter_np(col, poly_probs, n, k)    # (N,)

    return {'x': x, 'xe': xe, 'edges': edges, 'row': row, 'col': col,
            'ne_probs': ne_probs, 'Ldo': ldo, 'Lup': lup, 'np_probs': np_probs}


if __name__ == "__main__":
    hparams = {'use_gcn': False, 'dgm_layers': [4, 32, 16], 'dropout': 0.0,
               'gamma': 10.0, 'std': 1.0, 'k': 4}
    key = jax.random.PRNGKey(0)
    kx, kw1, kw2 = jax.random.split(key, 3)

    n_nodes = 16
    f_in, hid, d_emb = hparams['dgm_layers']
    x = jax.random.normal(kx, (n_nodes, f_in), jnp.float32)
    edge_index = jnp.stack([jnp.arange(n_nodes, dtype=jnp.int32),
                            (jnp.arange(n_nodes, dtype=jnp.int32) + 1) % n_nodes], axis=0)

    params = {
        'w1': 0.1 * jax.random.normal(kw1, (f_in, hid), jnp.float32),
        'b1': jnp.zeros((1, hid), jnp.float32),
        'w2': 0.1 * jax.random.normal(kw2, (hid, d_emb), jnp.float32),
        'b2': jnp.zeros((1, d_emb), jnp.float32),
        'ln_w': jnp.ones((1, 1), jnp.float32),    # torch.nn.LayerNorm(1) weight (unused: LN(1) == bias)
        'ln_b': jnp.zeros((1, 1), jnp.float32),   # torch.nn.LayerNorm(1) bias
    }

    data = {'x': x, 'edge_index': edge_index}
    out = dcm_forward(params, data, hparams)
    jax.tree_util.tree_map(jax.block_until_ready, out)
    print("KERNEL_OK")
</pallas_src>

<mosaic_0001>
module attributes {stable_mosaic.version = 11 : i64} {
  func.func @_mlp_kernel(%arg0: i32, %arg1: memref<256x4xf32, #tpu.memory_space<vmem>>, %arg2: memref<4x32xf32, #tpu.memory_space<vmem>>, %arg3: memref<1x32xf32, #tpu.memory_space<vmem>>, %arg4: memref<32x16xf32, #tpu.memory_space<vmem>>, %arg5: memref<1x16xf32, #tpu.memory_space<vmem>>, %arg6: memref<256x16xf32, #tpu.memory_space<vmem>>) attributes {dimension_semantics = [#tpu.dimension_semantics<parallel>], iteration_bounds = array<i64: 1>, scalar_prefetch = 0 : i64, scratch_operands = 0 : i64, tpu.core_type = #tpu.core_type<tc>, window_params = [{transform_indices = @transform_0, window_bounds = array<i64: 256, 4>}, {pipeline_mode = #tpu.pipeline_mode<synchronous>, transform_indices = @transform_1, window_bounds = array<i64: 4, 32>}, {pipeline_mode = #tpu.pipeline_mode<synchronous>, transform_indices = @transform_2, window_bounds = array<i64: 1, 32>}, {pipeline_mode = #tpu.pipeline_mode<synchronous>, transform_indices = @transform_3, window_bounds = array<i64: 32, 16>}, {pipeline_mode = #tpu.pipeline_mode<synchronous>, transform_indices = @transform_4, window_bounds = array<i64: 1, 16>}, {transform_indices = @transform_5, window_bounds = array<i64: 256, 16>}]} {
    %c0 = arith.constant 0 : index
    %c0_0 = arith.constant 0 : index
    %0 = vector.load %arg1[%c0, %c0_0] : memref<256x4xf32, #tpu.memory_space<vmem>>, vector<256x4xf32>
    %c0_1 = arith.constant 0 : index
    %c0_2 = arith.constant 0 : index
    %1 = vector.load %arg2[%c0_1, %c0_2] : memref<4x32xf32, #tpu.memory_space<vmem>>, vector<4x32xf32>
    %cst = arith.constant dense<0.000000e+00> : vector<256x32xf32>
    %2 = tpu.matmul %0, %1, %cst {dimension_numbers = #tpu.dot_dimension_numbers<[1], [0], [0], [1], [0, 0, 1, 1], [], []>} : vector<256x4xf32>, vector<4x32xf32>, vector<256x32xf32> -> vector<256x32xf32>
    %c0_3 = arith.constant 0 : index
    %c0_4 = arith.constant 0 : index
    %3 = vector.load %arg3[%c0_3, %c0_4] : memref<1x32xf32, #tpu.memory_space<vmem>>, vector<1x32xf32>
    %4 = vector.broadcast %3 : vector<1x32xf32> to vector<256x32xf32>
    %5 = arith.addf %2, %4 : vector<256x32xf32>
    %cst_5 = arith.constant 0.000000e+00 : f32
    %6 = vector.broadcast %cst_5 : f32 to vector<256x32xf32>
    %7 = arith.maximumf %5, %6 : vector<256x32xf32>
    %c0_6 = arith.constant 0 : index
    %c0_7 = arith.constant 0 : index
    %8 = vector.load %arg4[%c0_6, %c0_7] : memref<32x16xf32, #tpu.memory_space<vmem>>, vector<32x16xf32>
    %cst_8 = arith.constant dense<0.000000e+00> : vector<256x16xf32>
    %9 = tpu.matmul %7, %8, %cst_8 {dimension_numbers = #tpu.dot_dimension_numbers<[1], [0], [0], [1], [0, 0, 1, 1], [], []>} : vector<256x32xf32>, vector<32x16xf32>, vector<256x16xf32> -> vector<256x16xf32>
    %c0_9 = arith.constant 0 : index
    %c0_10 = arith.constant 0 : index
    %10 = vector.load %arg5[%c0_9, %c0_10] : memref<1x16xf32, #tpu.memory_space<vmem>>, vector<1x16xf32>
    %11 = vector.broadcast %10 : vector<1x16xf32> to vector<256x16xf32>
    %12 = arith.addf %9, %11 : vector<256x16xf32>
    %c0_11 = arith.constant 0 : index
    %c0_12 = arith.constant 0 : index
    %13 = vector.load %arg6[%c0_11, %c0_12] : memref<256x16xf32, #tpu.memory_space<vmem>>, vector<256x16xf32>
    tpu.vector_store %arg6[%c0_11, %c0_12], %12 {strides = array<i32>} : memref<256x16xf32, #tpu.memory_space<vmem>>, vector<256x16xf32>,
    return
  }
  func.func @transform_0(%arg0: i32) -> (i32, i32) {
    %c0_i32 = arith.constant 0 : i32
    %c0_i32_0 = arith.constant 0 : i32
    return %arg0, %c0_i32 : i32, i32
  }
  func.func @transform_1(%arg0: i32) -> (i32, i32) {
    %c0_i32 = arith.constant 0 : i32
    %c0_i32_0 = arith.constant 0 : i32
    %c0_i32_1 = arith.constant 0 : i32
    return %c0_i32, %c0_i32_0 : i32, i32
  }
  func.func @transform_2(%arg0: i32) -> (i32, i32) {
    %c0_i32 = arith.constant 0 : i32
    %c0_i32_0 = arith.constant 0 : i32
    %c0_i32_1 = arith.constant 0 : i32
    return %c0_i32, %c0_i32_0 : i32, i32
  }
  func.func @transform_3(%arg0: i32) -> (i32, i32) {
    %c0_i32 = arith.constant 0 : i32
    %c0_i32_0 = arith.constant 0 : i32
    %c0_i32_1 = arith.constant 0 : i32
    return %c0_i32, %c0_i32_0 : i32, i32
  }
  func.func @transform_4(%arg0: i32) -> (i32, i32) {
    %c0_i32 = arith.constant 0 : i32
    %c0_i32_0 = arith.constant 0 : i32
    %c0_i32_1 = arith.constant 0 : i32
    return %c0_i32, %c0_i32_0 : i32, i32
  }
  func.func @transform_5(%arg0: i32) -> (i32, i32) {
    %c0_i32 = arith.constant 0 : i32
    %c0_i32_0 = arith.constant 0 : i32
    return %arg0, %c0_i32 : i32, i32
  }
}

</mosaic_0001>

<bundles_post_ra>
// kernel: tpu_custom_call.1
= control target key start
LH: loop header
LB: loop body
LE: loop exit
PB: predicated region body
PF: predicated region fallthrough
CT: control target
= control target key end

     0   :  { %vm157_vm0 = vcmask 1043456   ;;  %vm60_vm1 = vcmask 31744   ;;  %vm429_vm2 = vcmask 261120   ;;  %vm751_vm3 = vcmask 130048   ;;  %s1437_s1 = inlined_call_operand.vmem [shape: f32[4,32], index: 1, kind: input, shape index: {}]   ;;  %s1438_s0 = inlined_call_operand.vmem [shape: f32[256,4], index: 0, kind: input, shape index: {}]   ;;  %s1439_s3 = inlined_call_operand.vmem [shape: f32[32,16], index: 3, kind: input, shape index: {}]   ;;  %s1440_s2 = inlined_call_operand.vmem [shape: f32[1,32], index: 2, kind: input, shape index: {}]   ;;  %s1441_s4 = inlined_call_operand.vmem [shape: f32[1,16], index: 4, kind: input, shape index: {}]   ;;  %s1442_s5 = inlined_call_operand.vmem [shape: f32[256,16], index: 5, kind: output, shape index: {}]  }
   0x1   :  { %v52_v0 = vld [vmem:[%s1437_s1] sm:$0xf]  ;;  %v21_v2 = vld [vmem:[%s1438_s0 + $0x8] sm:$0xff]  ;;  %v22_v3 = vld [vmem:[%s1438_s0 + $0x10] sm:$0xff] }
   0x2   :  { %v20_v1 = vld [vmem:[%s1438_s0] sm:$0xff]  ;;  %924 = vmatprep.subr.msk.mxu0 %vm157_vm0, %v52_v0  ;;  %v23_v4 = vld [vmem:[%s1438_s0 + $0x18] sm:$0xff]  ;;  %v25_v6 = vld [vmem:[%s1438_s0 + $0x28] sm:$0xff] }
   0x3   :  { %926 = vmatprep.mubr.msk.f32.mxu0 %vm60_vm1, %v20_v1  ;;  %925 = vmatpush3.msk.msra.mxu0 %vm157_vm0, %v52_v0  ;;  %v24_v5 = vld [vmem:[%s1438_s0 + $0x20] sm:$0xff]  ;;  %v26_v7 = vld [vmem:[%s1438_s0 + $0x30] sm:$0xff]  ;;  %v27_v8 = vld [vmem:[%s1438_s0 + $0x38] sm:$0xff] }
   0x4   :  { %927 = vmatmul.mubr.msk.f32.vlgmr.msra.gmra.mxu0 %vm60_vm1, %v21_v2  ;;  %v28_v9 = vld [vmem:[%s1438_s0 + $0x40] sm:$0xff]  ;;  %v29_v10 = vld [vmem:[%s1438_s0 + $0x48] sm:$0xff]  ;;  %v30_v11 = vld [vmem:[%s1438_s0 + $0x50] sm:$0xff] }
   0x5   :  { %929 = vmatprep.mubr.msk.f32.mxu0 %vm60_vm1, %v22_v3  ;;  %v31_v12 = vld [vmem:[%s1438_s0 + $0x58] sm:$0xff]  ;;  %v32_v13 = vld [vmem:[%s1438_s0 + $0x60] sm:$0xff]  ;;  %v33_v14 = vld [vmem:[%s1438_s0 + $0x68] sm:$0xff] }
   0x6   :  { %v34_v15 = vld [vmem:[%s1438_s0 + $0x70] sm:$0xff]  ;;  %v35_v16 = vld [vmem:[%s1438_s0 + $0x78] sm:$0xff]  ;;  %v36_v17 = vld [vmem:[%s1438_s0 + $0x80] sm:$0xff] }
   0x7   :  { %v37_v18 = vld [vmem:[%s1438_s0 + $0x88] sm:$0xff]  ;;  %v38_v19 = vld [vmem:[%s1438_s0 + $0x90] sm:$0xff]  ;;  %v39_v20 = vld [vmem:[%s1438_s0 + $0x98] sm:$0xff] }
   0x8   :  { %930 = vmatmul.mubr.msk.f32.gmra.mxu0 %vm60_vm1, %v23_v4  ;;  %v40_v21 = vld [vmem:[%s1438_s0 + $0xa0] sm:$0xff]  ;;  %v41_v22 = vld [vmem:[%s1438_s0 + $0xa8] sm:$0xff]  ;;  %v42_v23 = vld [vmem:[%s1438_s0 + $0xb0] sm:$0xff] }
   0x9   :  { %932 = vmatprep.mubr.msk.f32.mxu0 %vm60_vm1, %v24_v5  ;;  %v43_v24 = vld [vmem:[%s1438_s0 + $0xb8] sm:$0xff]  ;;  %v44_v25 = vld [vmem:[%s1438_s0 + $0xc0] sm:$0xff]  ;;  %v45_v26 = vld [vmem:[%s1438_s0 + $0xc8] sm:$0xff] }
   0xa   :  { %v46_v27 = vld [vmem:[%s1438_s0 + $0xd0] sm:$0xff]  ;;  %v47_v28 = vld [vmem:[%s1438_s0 + $0xd8] sm:$0xff]  ;;  %v48_v29 = vld [vmem:[%s1438_s0 + $0xe0] sm:$0xff] }
   0xb   :  { %v49_v30 = vld [vmem:[%s1438_s0 + $0xe8] sm:$0xff]  ;;  %v50_v31 = vld [vmem:[%s1438_s0 + $0xf0] sm:$0xff]  ;;  %v51_v32 = vld [vmem:[%s1438_s0 + $0xf8] sm:$0xff] }
   0xc   :  { %933 = vmatmul.mubr.msk.f32.gmra.mxu0 %vm60_vm1, %v25_v6  ;;  %v421_v33 = vld [vmem:[%s1439_s3 + $0x18] sm:$0xff]  ;;  %v420_v34 = vld [vmem:[%s1439_s3 + $0x10] sm:$0xff]  ;;  %v419_v35 = vld [vmem:[%s1439_s3 + $0x8] sm:$0xff] }
   0xd   :  { %935 = vmatprep.mubr.msk.f32.mxu0 %vm60_vm1, %v26_v7  ;;  %974 = vmatprep.subr.mxu1 %v421_v33  ;;  %v418_v36 = vld [vmem:[%s1439_s3] sm:$0xff] }
   0xe   :  { %975 = vmatpush3.msra.mxu1 %v421_v33  ;;  %v1206_v37 = vld [vmem:[%s1440_s2] ss:$0 sm:$0xff] }
   0xf   :  { %976 = vmatprep.subr.mxu1 %v420_v34 }
  0x10   :  { %936 = vmatmul.mubr.msk.f32.gmra.mxu0 %vm60_vm1, %v27_v8  ;;  %977 = vmatpush3.msra.mxu1 %v420_v34 }
  0x11   :  { %938 = vmatprep.mubr.msk.f32.mxu0 %vm60_vm1, %v28_v9  ;;  %978 = vmatprep.subr.mxu1 %v419_v35 }
  0x12   :  { %979 = vmatpush3.msra.mxu1 %v419_v35 }
  0x13   :  { %980 = vmatprep.subr.mxu1 %v418_v36 }
  0x14   :  { %939 = vmatmul.mubr.msk.f32.gmra.mxu0 %vm60_vm1, %v29_v10  ;;  %981 = vmatpush3.msra.mxu1 %v418_v36 }
  0x15   :  { %941 = vmatprep.mubr.msk.f32.mxu0 %vm60_vm1, %v30_v11 }
  0x18   :  { %942 = vmatmul.mubr.msk.f32.gmra.mxu0 %vm60_vm1, %v31_v12 }
  0x19   :  { %944 = vmatprep.mubr.msk.f32.mxu0 %vm60_vm1, %v32_v13 }
  0x1c   :  { %945 = vmatmul.mubr.msk.f32.gmra.mxu0 %vm60_vm1, %v33_v14 }
  0x1d   :  { %947 = vmatprep.mubr.msk.f32.mxu0 %vm60_vm1, %v34_v15 }
  0x20   :  { %948 = vmatmul.mubr.msk.f32.gmra.mxu0 %vm60_vm1, %v35_v16 }
  0x21   :  { %950 = vmatprep.mubr.msk.f32.mxu0 %vm60_vm1, %v36_v17 }
  0x24   :  { %951 = vmatmul.mubr.msk.f32.gmra.mxu0 %vm60_vm1, %v37_v18 }
  0x25   :  { %953 = vmatprep.mubr.msk.f32.mxu0 %vm60_vm1, %v38_v19 }
  0x28   :  { %954 = vmatmul.mubr.msk.f32.gmra.mxu0 %vm60_vm1, %v39_v20 }
  0x29   :  { %956 = vmatprep.mubr.msk.f32.mxu0 %vm60_vm1, %v40_v21 }
  0x2c   :  { %957 = vmatmul.mubr.msk.f32.gmra.mxu0 %vm60_vm1, %v41_v22 }
  0x2d   :  { %959 = vmatprep.mubr.msk.f32.mxu0 %vm60_vm1, %v42_v23 }
  0x30   :  { %960 = vmatmul.mubr.msk.f32.gmra.mxu0 %vm60_vm1, %v43_v24 }
  0x31   :  { %962 = vmatprep.mubr.msk.f32.mxu0 %vm60_vm1, %v44_v25 }
  0x34   :  { %963 = vmatmul.mubr.msk.f32.gmra.mxu0 %vm60_vm1, %v45_v26 }
  0x35   :  { %965 = vmatprep.mubr.msk.f32.mxu0 %vm60_vm1, %v46_v27 }
  0x38   :  { %966 = vmatmul.mubr.msk.f32.gmra.mxu0 %vm60_vm1, %v47_v28 }
  0x39   :  { %968 = vmatprep.mubr.msk.f32.mxu0 %vm60_vm1, %v48_v29 }
  0x3c   :  { %969 = vmatmul.mubr.msk.f32.gmra.mxu0 %vm60_vm1, %v49_v30 }
  0x3d   :  { %971 = vmatprep.mubr.msk.f32.mxu0 %vm60_vm1, %v50_v31 }
  0x40   :  { %972 = vmatmul.mubr.msk.f32.gmra.mxu0 %vm60_vm1, %v51_v32 }
  0xc4   :  { %v928_v38 = vpop.f32.mrf.mxu0 }
  0xc5   :  { %v233_v39 = vadd.f32 %v928_v38, %v1206_v37 }
  0xc6   :  { %v227_v40 = vpop.f32.mrf.mxu0 }
  0xc7   :  { %v228_v41 = vadd.f32 %v1206_v37, %v227_v40  ;;  %v387_v44 = vmax.f32 %v233_v39, 0.0 }
  0xc8   :  { %v931_v42 = vpop.f32.mrf.mxu0 }
  0xc9   :  { %v386_v43 = vmax.f32 %v228_v41, 0.0  ;;  %v243_v45 = vadd.f32 %v931_v42, %v1206_v37 }
  0xca   :  { %v237_v46 = vpop.f32.mrf.mxu0 }
  0xcb   :  { %v238_v47 = vadd.f32 %v1206_v37, %v237_v46  ;;  %982 = vmatprep.mubr.msk.f32.mxu1 %vm429_vm2, %v386_v43  ;;  %v389_v50 = vmax.f32 %v243_v45, 0.0 }
  0xcc   :  { %v934_v48 = vpop.f32.mrf.mxu0  ;;  %983 = vmatmul.mubr.msk.f32.vlgmr.msra.gmra.mxu1 %vm429_vm2, %v387_v44 }
  0xcd   :  { %v388_v49 = vmax.f32 %v238_v47, 0.0  ;;  %v253_v51 = vadd.f32 %v934_v48, %v1206_v37 }
  0xce   :  { %v247_v52 = vpop.f32.mrf.mxu0 }
  0xcf   :  { %v248_v53 = vadd.f32 %v1206_v37, %v247_v52  ;;  %985 = vmatprep.mubr.msk.f32.mxu1 %vm429_vm2, %v388_v49  ;;  %v391_v56 = vmax.f32 %v253_v51, 0.0 }
  0xd0   :  { %v937_v54 = vpop.f32.mrf.mxu0  ;;  %986 = vmatmul.mubr.msk.f32.gmra.mxu1 %vm429_vm2, %v389_v50 }
  0xd1   :  { %v390_v55 = vmax.f32 %v248_v53, 0.0  ;;  %v263_v57 = vadd.f32 %v937_v54, %v1206_v37 }
  0xd2   :  { %v257_v58 = vpop.f32.mrf.mxu0 }
  0xd3   :  { %v258_v59 = vadd.f32 %v1206_v37, %v257_v58  ;;  %988 = vmatprep.mubr.msk.f32.mxu1 %vm429_vm2, %v390_v55  ;;  %v393_v62 = vmax.f32 %v263_v57, 0.0 }
  0xd4   :  { %v940_v60 = vpop.f32.mrf.mxu0  ;;  %989 = vmatmul.mubr.msk.f32.gmra.mxu1 %vm429_vm2, %v391_v56 }
  0xd5   :  { %v392_v61 = vmax.f32 %v258_v59, 0.0  ;;  %v273_v63 = vadd.f32 %v940_v60, %v1206_v37 }
  0xd6   :  { %v267_v0 = vpop.f32.mrf.mxu0 }
  0xd7   :  { %v268_v1 = vadd.f32 %v1206_v37, %v267_v0  ;;  %991 = vmatprep.mubr.msk.f32.mxu1 %vm429_vm2, %v392_v61  ;;  %v395_v4 = vmax.f32 %v273_v63, 0.0 }
  0xd8   :  { %v943_v2 = vpop.f32.mrf.mxu0  ;;  %992 = vmatmul.mubr.msk.f32.gmra.mxu1 %vm429_vm2, %v393_v62 }
  0xd9   :  { %v394_v3 = vmax.f32 %v268_v1, 0.0  ;;  %v283_v5 = vadd.f32 %v943_v2, %v1206_v37 }
  0xda   :  { %v277_v6 = vpop.f32.mrf.mxu0 }
  0xdb   :  { %v278_v7 = vadd.f32 %v1206_v37, %v277_v6  ;;  %994 = vmatprep.mubr.msk.f32.mxu1 %vm429_vm2, %v394_v3  ;;  %v397_v10 = vmax.f32 %v283_v5, 0.0 }
  0xdc   :  { %v946_v8 = vpop.f32.mrf.mxu0  ;;  %995 = vmatmul.mubr.msk.f32.gmra.mxu1 %vm429_vm2, %v395_v4 }
  0xdd   :  { %v396_v9 = vmax.f32 %v278_v7, 0.0  ;;  %v293_v11 = vadd.f32 %v946_v8, %v1206_v37  ;;  %v1275_v7 = vld [vmem:[%s1441_s4] ss:$0 sm:$0xff] }
  0xde   :  { %v287_v12 = vpop.f32.mrf.mxu0 }
  0xdf   :  { %v288_v13 = vadd.f32 %v1206_v37, %v287_v12  ;;  %997 = vmatprep.mubr.msk.f32.mxu1 %vm429_vm2, %v396_v9  ;;  %v399_v16 = vmax.f32 %v293_v11, 0.0 }
  0xe0   :  { %v949_v14 = vpop.f32.mrf.mxu0  ;;  %998 = vmatmul.mubr.msk.f32.gmra.mxu1 %vm429_vm2, %v397_v10 }
  0xe1   :  { %v398_v15 = vmax.f32 %v288_v13, 0.0  ;;  %v303_v17 = vadd.f32 %v949_v14, %v1206_v37 }
  0xe2   :  { %v297_v18 = vpop.f32.mrf.mxu0 }
  0xe3   :  { %v298_v19 = vadd.f32 %v1206_v37, %v297_v18  ;;  %1000 = vmatprep.mubr.msk.f32.mxu1 %vm429_vm2, %v398_v15  ;;  %v401_v22 = vmax.f32 %v303_v17, 0.0 }
  0xe4   :  { %v952_v20 = vpop.f32.mrf.mxu0  ;;  %1001 = vmatmul.mubr.msk.f32.gmra.mxu1 %vm429_vm2, %v399_v16 }
  0xe5   :  { %v400_v21 = vmax.f32 %v298_v19, 0.0  ;;  %v313_v23 = vadd.f32 %v952_v20, %v1206_v37 }
  0xe6   :  { %v307_v24 = vpop.f32.mrf.mxu0 }
  0xe7   :  { %v308_v25 = vadd.f32 %v1206_v37, %v307_v24  ;;  %1003 = vmatprep.mubr.msk.f32.mxu1 %vm429_vm2, %v400_v21  ;;  %v403_v28 = vmax.f32 %v313_v23, 0.0 }
  0xe8   :  { %v955_v26 = vpop.f32.mrf.mxu0  ;;  %1004 = vmatmul.mubr.msk.f32.gmra.mxu1 %vm429_vm2, %v401_v22 }
  0xe9   :  { %v402_v27 = vmax.f32 %v308_v25, 0.0  ;;  %v323_v29 = vadd.f32 %v955_v26, %v1206_v37 }
  0xea   :  { %v317_v30 = vpop.f32.mrf.mxu0 }
  0xeb   :  { %v318_v31 = vadd.f32 %v1206_v37, %v317_v30  ;;  %1006 = vmatprep.mubr.msk.f32.mxu1 %vm429_vm2, %v402_v27  ;;  %v405_v34 = vmax.f32 %v323_v29, 0.0 }
  0xec   :  { %v958_v32 = vpop.f32.mrf.mxu0  ;;  %1007 = vmatmul.mubr.msk.f32.gmra.mxu1 %vm429_vm2, %v403_v28 }
  0xed   :  { %v404_v33 = vmax.f32 %v318_v31, 0.0  ;;  %v333_v35 = vadd.f32 %v958_v32, %v1206_v37 }
  0xee   :  { %v327_v36 = vpop.f32.mrf.mxu0 }
  0xef   :  { %v328_v38 = vadd.f32 %v1206_v37, %v327_v36  ;;  %1009 = vmatprep.mubr.msk.f32.mxu1 %vm429_vm2, %v404_v33  ;;  %v407_v41 = vmax.f32 %v333_v35, 0.0 }
  0xf0   :  { %v961_v39 = vpop.f32.mrf.mxu0  ;;  %1010 = vmatmul.mubr.msk.f32.gmra.mxu1 %vm429_vm2, %v405_v34 }
  0xf1   :  { %v406_v40 = vmax.f32 %v328_v38, 0.0  ;;  %v343_v42 = vadd.f32 %v961_v39, %v1206_v37 }
  0xf2   :  { %v337_v43 = vpop.f32.mrf.mxu0 }
  0xf3   :  { %v338_v44 = vadd.f32 %v1206_v37, %v337_v43  ;;  %1012 = vmatprep.mubr.msk.f32.mxu1 %vm429_vm2, %v406_v40  ;;  %v409_v47 = vmax.f32 %v343_v42, 0.0 }
  0xf4   :  { %v964_v45 = vpop.f32.mrf.mxu0  ;;  %1013 = vmatmul.mubr.msk.f32.gmra.mxu1 %vm429_vm2, %v407_v41 }
  0xf5   :  { %v408_v46 = vmax.f32 %v338_v44, 0.0  ;;  %v353_v48 = vadd.f32 %v964_v45, %v1206_v37 }
  0xf6   :  { %v347_v49 = vpop.f32.mrf.mxu0 }
  0xf7   :  { %v348_v50 = vadd.f32 %v1206_v37, %v347_v49  ;;  %1015 = vmatprep.mubr.msk.f32.mxu1 %vm429_vm2, %v408_v46  ;;  %v411_v53 = vmax.f32 %v353_v48, 0.0 }
  0xf8   :  { %v967_v51 = vpop.f32.mrf.mxu0  ;;  %1016 = vmatmul.mubr.msk.f32.gmra.mxu1 %vm429_vm2, %v409_v47 }
  0xf9   :  { %v410_v52 = vmax.f32 %v348_v50, 0.0  ;;  %v363_v54 = vadd.f32 %v967_v51, %v1206_v37 }
  0xfa   :  { %v357_v55 = vpop.f32.mrf.mxu0 }
  0xfb   :  { %v358_v56 = vadd.f32 %v1206_v37, %v357_v55  ;;  %1018 = vmatprep.mubr.msk.f32.mxu1 %vm429_vm2, %v410_v52  ;;  %v413_v59 = vmax.f32 %v363_v54, 0.0 }
  0xfc   :  { %v970_v57 = vpop.f32.mrf.mxu0  ;;  %1019 = vmatmul.mubr.msk.f32.gmra.mxu1 %vm429_vm2, %v411_v53 }
  0xfd   :  { %v412_v58 = vmax.f32 %v358_v56, 0.0  ;;  %v373_v60 = vadd.f32 %v970_v57, %v1206_v37 }
  0xfe   :  { %v367_v61 = vpop.f32.mrf.mxu0 }
  0xff   :  { %v368_v62 = vadd.f32 %v1206_v37, %v367_v61  ;;  %1021 = vmatprep.mubr.msk.f32.mxu1 %vm429_vm2, %v412_v58  ;;  %v415_v1 = vmax.f32 %v373_v60, 0.0 }
 0x100   :  { %v973_v63 = vpop.f32.mrf.mxu0  ;;  %1022 = vmatmul.mubr.msk.f32.gmra.mxu1 %vm429_vm2, %v413_v59 }
 0x101   :  { %v414_v0 = vmax.f32 %v368_v62, 0.0  ;;  %v383_v2 = vadd.f32 %v973_v63, %v1206_v37 }
 0x102   :  { %v377_v3 = vpop.f32.mrf.mxu0 }
 0x103   :  { %v378_v4 = vadd.f32 %v1206_v37, %v377_v3  ;;  %1024 = vmatprep.mubr.msk.f32.mxu1 %vm429_vm2, %v414_v0  ;;  %v417_v6 = vmax.f32 %v383_v2, 0.0 }
 0x104   :  { %1025 = vmatmul.mubr.msk.f32.gmra.mxu1 %vm429_vm2, %v415_v1 }
 0x105   :  { %v416_v5 = vmax.f32 %v378_v4, 0.0 }
 0x107   :  { %1027 = vmatprep.mubr.msk.f32.mxu1 %vm429_vm2, %v416_v5 }
 0x108   :  { %1028 = vmatmul.mubr.msk.f32.gmra.mxu1 %vm429_vm2, %v417_v6 }
 0x18c   :  { %v984_v8 = vpop.f32.mrf.mxu1 }
 0x18d   :  { %v598_v9 = vadd.f32 %v984_v8, %v1275_v7 }
 0x18e   :  { %v592_v37 = vpop.f32.mrf.mxu1 }
 0x18f   :  { %753 = vst.msk [vmem:[%s1442_s5 + $0x8] sm:$0xff] %vm751_vm3, %v598_v9  ;;  %v593_v10 = vadd.f32 %v1275_v7, %v592_v37 }
 0x190   :  { %v987_v11 = vpop.f32.mrf.mxu1 }
 0x191   :  { %752 = vst.msk [vmem:[%s1442_s5] sm:$0xff] %vm751_vm3, %v593_v10  ;;  %v608_v12 = vadd.f32 %v987_v11, %v1275_v7 }
 0x192   :  { %v602_v13 = vpop.f32.mrf.mxu1 }
 0x193   :  { %755 = vst.msk [vmem:[%s1442_s5 + $0x18] sm:$0xff] %vm751_vm3, %v608_v12  ;;  %v603_v14 = vadd.f32 %v1275_v7, %v602_v13 }
 0x194   :  { %v990_v15 = vpop.f32.mrf.mxu1 }
 0x195   :  { %754 = vst.msk [vmem:[%s1442_s5 + $0x10] sm:$0xff] %vm751_vm3, %v603_v14  ;;  %v618_v16 = vadd.f32 %v990_v15, %v1275_v7 }
 0x196   :  { %v612_v17 = vpop.f32.mrf.mxu1 }
 0x197   :  { %757 = vst.msk [vmem:[%s1442_s5 + $0x28] sm:$0xff] %vm751_vm3, %v618_v16  ;;  %v613_v18 = vadd.f32 %v1275_v7, %v612_v17 }
 0x198   :  { %v993_v19 = vpop.f32.mrf.mxu1 }
 0x199   :  { %756 = vst.msk [vmem:[%s1442_s5 + $0x20] sm:$0xff] %vm751_vm3, %v613_v18  ;;  %v628_v20 = vadd.f32 %v993_v19, %v1275_v7 }
 0x19a   :  { %v622_v21 = vpop.f32.mrf.mxu1 }
 0x19b   :  { %759 = vst.msk [vmem:[%s1442_s5 + $0x38] sm:$0xff] %vm751_vm3, %v628_v20  ;;  %v623_v22 = vadd.f32 %v1275_v7, %v622_v21 }
 0x19c   :  { %v996_v23 = vpop.f32.mrf.mxu1 }
 0x19d   :  { %758 = vst.msk [vmem:[%s1442_s5 + $0x30] sm:$0xff] %vm751_vm3, %v623_v22  ;;  %v638_v24 = vadd.f32 %v996_v23, %v1275_v7 }
 0x19e   :  { %v632_v25 = vpop.f32.mrf.mxu1 }
 0x19f   :  { %761 = vst.msk [vmem:[%s1442_s5 + $0x48] sm:$0xff] %vm751_vm3, %v638_v24  ;;  %v633_v26 = vadd.f32 %v1275_v7, %v632_v25 }
 0x1a0   :  { %v999_v27 = vpop.f32.mrf.mxu1 }
 0x1a1   :  { %760 = vst.msk [vmem:[%s1442_s5 + $0x40] sm:$0xff] %vm751_vm3, %v633_v26  ;;  %v648_v28 = vadd.f32 %v999_v27, %v1275_v7 }
 0x1a2   :  { %v642_v29 = vpop.f32.mrf.mxu1 }
 0x1a3   :  { %763 = vst.msk [vmem:[%s1442_s5 + $0x58] sm:$0xff] %vm751_vm3, %v648_v28  ;;  %v643_v30 = vadd.f32 %v1275_v7, %v642_v29 }
 0x1a4   :  { %v1002_v31 = vpop.f32.mrf.mxu1 }
 0x1a5   :  { %762 = vst.msk [vmem:[%s1442_s5 + $0x50] sm:$0xff] %vm751_vm3, %v643_v30  ;;  %v658_v32 = vadd.f32 %v1002_v31, %v1275_v7 }
 0x1a6   :  { %v652_v33 = vpop.f32.mrf.mxu1 }
 0x1a7   :  { %765 = vst.msk [vmem:[%s1442_s5 + $0x68] sm:$0xff] %vm751_vm3, %v658_v32  ;;  %v653_v34 = vadd.f32 %v1275_v7, %v652_v33 }
 0x1a8   :  { %v1005_v35 = vpop.f32.mrf.mxu1 }
 0x1a9   :  { %764 = vst.msk [vmem:[%s1442_s5 + $0x60] sm:$0xff] %vm751_vm3, %v653_v34  ;;  %v668_v36 = vadd.f32 %v1005_v35, %v1275_v7 }
 0x1aa   :  { %v662_v38 = vpop.f32.mrf.mxu1 }
 0x1ab   :  { %767 = vst.msk [vmem:[%s1442_s5 + $0x78] sm:$0xff] %vm751_vm3, %v668_v36  ;;  %v663_v39 = vadd.f32 %v1275_v7, %v662_v38 }
 0x1ac   :  { %v1008_v40 = vpop.f32.mrf.mxu1 }
 0x1ad   :  { %766 = vst.msk [vmem:[%s1442_s5 + $0x70] sm:$0xff] %vm751_vm3, %v663_v39  ;;  %v678_v41 = vadd.f32 %v1008_v40, %v1275_v7 }
 0x1ae   :  { %v672_v42 = vpop.f32.mrf.mxu1 }
 0x1af   :  { %769 = vst.msk [vmem:[%s1442_s5 + $0x88] sm:$0xff] %vm751_vm3, %v678_v41  ;;  %v673_v43 = vadd.f32 %v1275_v7, %v672_v42 }
 0x1b0   :  { %v1011_v44 = vpop.f32.mrf.mxu1 }
 0x1b1   :  { %768 = vst.msk [vmem:[%s1442_s5 + $0x80] sm:$0xff] %vm751_vm3, %v673_v43  ;;  %v688_v45 = vadd.f32 %v1011_v44, %v1275_v7 }
 0x1b2   :  { %v682_v46 = vpop.f32.mrf.mxu1 }
 0x1b3   :  { %771 = vst.msk [vmem:[%s1442_s5 + $0x98] sm:$0xff] %vm751_vm3, %v688_v45  ;;  %v683_v47 = vadd.f32 %v1275_v7, %v682_v46 }
 0x1b4   :  { %v1014_v48 = vpop.f32.mrf.mxu1 }
 0x1b5   :  { %770 = vst.msk [vmem:[%s1442_s5 + $0x90] sm:$0xff] %vm751_vm3, %v683_v47  ;;  %v698_v49 = vadd.f32 %v1014_v48, %v1275_v7 }
 0x1b6   :  { %v692_v50 = vpop.f32.mrf.mxu1 }
 0x1b7   :  { %773 = vst.msk [vmem:[%s1442_s5 + $0xa8] sm:$0xff] %vm751_vm3, %v698_v49  ;;  %v693_v51 = vadd.f32 %v1275_v7, %v692_v50 }
 0x1b8   :  { %v1017_v52 = vpop.f32.mrf.mxu1 }
 0x1b9   :  { %772 = vst.msk [vmem:[%s1442_s5 + $0xa0] sm:$0xff] %vm751_vm3, %v693_v51  ;;  %v708_v53 = vadd.f32 %v1017_v52, %v1275_v7 }
 0x1ba   :  { %v702_v54 = vpop.f32.mrf.mxu1 }
 0x1bb   :  { %775 = vst.msk [vmem:[%s1442_s5 + $0xb8] sm:$0xff] %vm751_vm3, %v708_v53  ;;  %v703_v55 = vadd.f32 %v1275_v7, %v702_v54 }
 0x1bc   :  { %v1020_v56 = vpop.f32.mrf.mxu1 }
 0x1bd   :  { %774 = vst.msk [vmem:[%s1442_s5 + $0xb0] sm:$0xff] %vm751_vm3, %v703_v55  ;;  %v718_v57 = vadd.f32 %v1020_v56, %v1275_v7 }
 0x1be   :  { %v712_v58 = vpop.f32.mrf.mxu1 }
 0x1bf   :  { %777 = vst.msk [vmem:[%s1442_s5 + $0xc8] sm:$0xff] %vm751_vm3, %v718_v57  ;;  %v713_v59 = vadd.f32 %v1275_v7, %v712_v58 }
 0x1c0   :  { %v1023_v60 = vpop.f32.mrf.mxu1 }
 0x1c1   :  { %776 = vst.msk [vmem:[%s1442_s5 + $0xc0] sm:$0xff] %vm751_vm3, %v713_v59  ;;  %v728_v61 = vadd.f32 %v1023_v60, %v1275_v7 }
 0x1c2   :  { %v722_v62 = vpop.f32.mrf.mxu1 }
 0x1c3   :  { %779 = vst.msk [vmem:[%s1442_s5 + $0xd8] sm:$0xff] %vm751_vm3, %v728_v61  ;;  %v723_v63 = vadd.f32 %v1275_v7, %v722_v62 }
 0x1c4   :  { %v1026_v0 = vpop.f32.mrf.mxu1 }
 0x1c5   :  { %778 = vst.msk [vmem:[%s1442_s5 + $0xd0] sm:$0xff] %vm751_vm3, %v723_v63  ;;  %v738_v1 = vadd.f32 %v1026_v0, %v1275_v7 }
 0x1c6   :  { %v732_v2 = vpop.f32.mrf.mxu1 }
 0x1c7   :  { %781 = vst.msk [vmem:[%s1442_s5 + $0xe8] sm:$0xff] %vm751_vm3, %v738_v1  ;;  %v733_v3 = vadd.f32 %v1275_v7, %v732_v2 }
 0x1c8   :  { %v1029_v4 = vpop.f32.mrf.mxu1 }
 0x1c9   :  { %780 = vst.msk [vmem:[%s1442_s5 + $0xe0] sm:$0xff] %vm751_vm3, %v733_v3  ;;  %v748_v5 = vadd.f32 %v1029_v4, %v1275_v7 }
 0x1ca   :  { %v742_v6 = vpop.f32.mrf.mxu1 }
 0x1cb   :  { %783 = vst.msk [vmem:[%s1442_s5 + $0xf8] sm:$0xff] %vm751_vm3, %v748_v5  ;;  %v743_v8 = vadd.f32 %v1275_v7, %v742_v6 }
 0x1cd   :  { %782 = vst.msk [vmem:[%s1442_s5 + $0xf0] sm:$0xff] %vm751_vm3, %v743_v8 }

</bundles_post_ra>
